<compile_context>
chip_gen: v7x
topology: tpu7x:2x2x1
jax: 0.10.0
libtpu: 0.0.40
codegen_flags: <defaults>
</compile_context>

<pallas_src>
import functools

import jax
import jax.numpy as jnp
from jax.experimental import pallas as pl
from jax.experimental.pallas import tpu as pltpu

_LANE = 128


def _round_up(n, m):
    return (n + m - 1) // m * m


def _actor_kernel(x_ref, w1_ref, b1_ref, w2_ref, b2_ref, w3_ref, b3_ref,
                  wp_ref, bp_ref, out_ref, *, action_scaling):
    """Forward pass for one batch tile; all weights resident in VMEM."""

    def dense(h, w_ref, b_ref):
        # bf16 matmul inputs, f32 accumulation, f32 bias add.
        return jnp.dot(h.astype(jnp.bfloat16), w_ref[...],
                       preferred_element_type=jnp.float32) + b_ref[...]

    h = jnp.maximum(dense(x_ref[...], w1_ref, b1_ref), 0.0)
    h = jnp.maximum(dense(h, w2_ref, b2_ref), 0.0)
    h = jnp.maximum(dense(h, w3_ref, b3_ref), 0.0)
    a = jnp.tanh(dense(h, wp_ref, bp_ref)) * action_scaling
    out_ref[...] = a.astype(out_ref.dtype)


def actor_forward(x, params, action_scaling=1.0, block_b=256):
    """params: dict with w1,b1,w2,b2,w3,b3,wp,bp; weights are (in, out) bf16."""
    B, in_dim = x.shape
    out_dim = params["wp"].shape[1]

    # Lane-dense output: zero-pad the pi layer to a multiple of 128 columns.
    out_pad = _round_up(max(out_dim, _LANE), _LANE)
    wp, bp = params["wp"], params["bp"]
    if out_pad != out_dim:
        wp = jnp.pad(wp, ((0, 0), (0, out_pad - out_dim)))
        bp = jnp.pad(bp, ((0, 0), (0, out_pad - out_dim)))

    # Batch tiling: pad B up to a sublane-friendly tile and grid over batch.
    tb = min(block_b, _round_up(B, 8))
    b_pad = _round_up(B, tb)
    if b_pad != B:
        x = jnp.pad(x, ((0, b_pad - B), (0, 0)))

    args = (x,
            params["w1"], params["b1"],
            params["w2"], params["b2"],
            params["w3"], params["b3"],
            wp, bp)

    def resident_spec(shape):
        # Whole-array block with a constant block index: the array is DMA'd
        # once and stays resident in VMEM for the whole grid.
        return pl.BlockSpec(shape, lambda i: (0, 0))

    in_specs = ([pl.BlockSpec((tb, in_dim), lambda i: (i, 0))]
                + [resident_spec(a.shape) for a in args[1:]])
    out_spec = pl.BlockSpec((tb, out_pad), lambda i: (i, 0))

    kernel = functools.partial(_actor_kernel, action_scaling=action_scaling)

    out = pl.pallas_call(
        kernel,
        out_shape=jax.ShapeDtypeStruct((b_pad, out_pad), jnp.float32),
        grid=(b_pad // tb,),
        in_specs=in_specs,
        out_specs=out_spec,
        compiler_params=pltpu.CompilerParams(
            dimension_semantics=("parallel",)),  # dual-TC sharding on v7x
    )(*args)

    return out[:B, :out_dim]


def _orthogonal(key, out_features, in_features, gain=1.0):
    """Orthogonal init matching nn.init.orthogonal_ semantics, returned
    transposed to (in_features, out_features)."""
    w = jax.nn.initializers.orthogonal(scale=gain)(
        key, (out_features, in_features), jnp.float32)
    return w.T  # (in, out)


def init_actor_params(key, input_dim, output_dim,
                      fc1_size=256, fc2_size=256, fc3_size=256):
    k1, k2, k3, k4 = jax.random.split(key, 4)
    params = {
        "w1": _orthogonal(k1, fc1_size, input_dim).astype(jnp.bfloat16),
        "b1": jnp.zeros((1, fc1_size), jnp.float32),
        "w2": _orthogonal(k2, fc2_size, fc1_size).astype(jnp.bfloat16),
        "b2": jnp.zeros((1, fc2_size), jnp.float32),
        "w3": _orthogonal(k3, fc3_size, fc2_size).astype(jnp.bfloat16),
        "b3": jnp.zeros((1, fc3_size), jnp.float32),
        "wp": _orthogonal(k4, output_dim, fc3_size).astype(jnp.bfloat16),
        "bp": jnp.zeros((1, output_dim), jnp.float32),
    }
    return params


def actor_reference(x, params, action_scaling=1.0):
    """Pure-JAX reference with the same precision policy as the kernel
    (bf16 matmul inputs, f32 accumulation / bias / activations)."""

    def dense(h, w, b):
        return jnp.dot(h.astype(jnp.bfloat16), w,
                       preferred_element_type=jnp.float32) + b

    h = jax.nn.relu(dense(x, params["w1"], params["b1"]))
    h = jax.nn.relu(dense(h, params["w2"], params["b2"]))
    h = jax.nn.relu(dense(h, params["w3"], params["b3"]))
    return jnp.tanh(dense(h, params["wp"], params["bp"])) * action_scaling


if __name__ == "__main__":
    key = jax.random.PRNGKey(0)
    k_param, k_x, k_x2 = jax.random.split(key, 3)

    input_dim = 16      # observation dim
    output_dim = 4      # action dim
    action_scaling = 2.0

    params = init_actor_params(k_param, input_dim, output_dim)

    # Small batch (single grid step, padded to 8 sublane rows internally).
    batch = 2
    x = jax.random.normal(k_x, (batch, input_dim), jnp.float32)
    out = jax.block_until_ready(
        actor_forward(x, params, action_scaling=action_scaling))
    ref = actor_reference(x, params, action_scaling=action_scaling)
    assert out.shape == (batch, output_dim)
    assert jnp.allclose(out, ref, atol=1e-3, rtol=1e-3), "mismatch vs reference"

    # Larger, non-multiple batch to exercise the batch-tiled grid path.
    batch2 = 300
    x2 = jax.random.normal(k_x2, (batch2, input_dim), jnp.float32)
    out2 = jax.block_until_ready(
        actor_forward(x2, params, action_scaling=action_scaling))
    ref2 = actor_reference(x2, params, action_scaling=action_scaling)
    assert out2.shape == (batch2, output_dim)
    assert jnp.allclose(out2, ref2, atol=1e-3, rtol=1e-3), "mismatch vs reference"

    print("KERNEL_OK")
</pallas_src>

<mosaic_0001>
module attributes {stable_mosaic.version = 11 : i64} {
  func.func @_actor_kernel(%arg0: i32, %arg1: memref<8x16xf32, #tpu.memory_space<vmem>>, %arg2: memref<16x256xbf16, #tpu.memory_space<vmem>>, %arg3: memref<1x256xf32, #tpu.memory_space<vmem>>, %arg4: memref<256x256xbf16, #tpu.memory_space<vmem>>, %arg5: memref<1x256xf32, #tpu.memory_space<vmem>>, %arg6: memref<256x256xbf16, #tpu.memory_space<vmem>>, %arg7: memref<1x256xf32, #tpu.memory_space<vmem>>, %arg8: memref<256x128xbf16, #tpu.memory_space<vmem>>, %arg9: memref<1x128xf32, #tpu.memory_space<vmem>>, %arg10: memref<8x128xf32, #tpu.memory_space<vmem>>) attributes {dimension_semantics = [#tpu.dimension_semantics<parallel>], iteration_bounds = array<i64: 1>, scalar_prefetch = 0 : i64, scratch_operands = 0 : i64, tpu.core_type = #tpu.core_type<tc>, window_params = [{transform_indices = @transform_0, window_bounds = array<i64: 8, 16>}, {pipeline_mode = #tpu.pipeline_mode<synchronous>, transform_indices = @transform_1, window_bounds = array<i64: 16, 256>}, {pipeline_mode = #tpu.pipeline_mode<synchronous>, transform_indices = @transform_2, window_bounds = array<i64: 1, 256>}, {pipeline_mode = #tpu.pipeline_mode<synchronous>, transform_indices = @transform_3, window_bounds = array<i64: 256, 256>}, {pipeline_mode = #tpu.pipeline_mode<synchronous>, transform_indices = @transform_4, window_bounds = array<i64: 1, 256>}, {pipeline_mode = #tpu.pipeline_mode<synchronous>, transform_indices = @transform_5, window_bounds = array<i64: 256, 256>}, {pipeline_mode = #tpu.pipeline_mode<synchronous>, transform_indices = @transform_6, window_bounds = array<i64: 1, 256>}, {pipeline_mode = #tpu.pipeline_mode<synchronous>, transform_indices = @transform_7, window_bounds = array<i64: 256, 128>}, {pipeline_mode = #tpu.pipeline_mode<synchronous>, transform_indices = @transform_8, window_bounds = array<i64: 1, 128>}, {transform_indices = @transform_9, window_bounds = array<i64: 8, 128>}]} {
    %c0 = arith.constant 0 : index
    %c0_0 = arith.constant 0 : index
    %0 = vector.load %arg1[%c0, %c0_0] : memref<8x16xf32, #tpu.memory_space<vmem>>, vector<8x16xf32>
    %1 = arith.truncf %0 : vector<8x16xf32> to vector<8x16xbf16>
    %c0_1 = arith.constant 0 : index
    %c0_2 = arith.constant 0 : index
    %2 = vector.load %arg2[%c0_1, %c0_2] : memref<16x256xbf16, #tpu.memory_space<vmem>>, vector<16x256xbf16>
    %cst = arith.constant dense<0.000000e+00> : vector<8x256xf32>
    %3 = tpu.matmul %1, %2, %cst {dimension_numbers = #tpu.dot_dimension_numbers<[1], [0], [0], [1], [0, 0, 1, 1], [], []>} : vector<8x16xbf16>, vector<16x256xbf16>, vector<8x256xf32> -> vector<8x256xf32>
    %c0_3 = arith.constant 0 : index
    %c0_4 = arith.constant 0 : index
    %4 = vector.load %arg3[%c0_3, %c0_4] : memref<1x256xf32, #tpu.memory_space<vmem>>, vector<1x256xf32>
    %5 = vector.broadcast %4 : vector<1x256xf32> to vector<8x256xf32>
    %6 = arith.addf %3, %5 : vector<8x256xf32>
    %cst_5 = arith.constant 0.000000e+00 : f32
    %7 = vector.broadcast %cst_5 : f32 to vector<8x256xf32>
    %8 = arith.maximumf %6, %7 : vector<8x256xf32>
    %9 = arith.truncf %8 : vector<8x256xf32> to vector<8x256xbf16>
    %c0_6 = arith.constant 0 : index
    %c0_7 = arith.constant 0 : index
    %10 = vector.load %arg4[%c0_6, %c0_7] : memref<256x256xbf16, #tpu.memory_space<vmem>>, vector<256x256xbf16>
    %cst_8 = arith.constant dense<0.000000e+00> : vector<8x256xf32>
    %11 = tpu.matmul %9, %10, %cst_8 {dimension_numbers = #tpu.dot_dimension_numbers<[1], [0], [0], [1], [0, 0, 1, 1], [], []>} : vector<8x256xbf16>, vector<256x256xbf16>, vector<8x256xf32> -> vector<8x256xf32>
    %c0_9 = arith.constant 0 : index
    %c0_10 = arith.constant 0 : index
    %12 = vector.load %arg5[%c0_9, %c0_10] : memref<1x256xf32, #tpu.memory_space<vmem>>, vector<1x256xf32>
    %13 = vector.broadcast %12 : vector<1x256xf32> to vector<8x256xf32>
    %14 = arith.addf %11, %13 : vector<8x256xf32>
    %cst_11 = arith.constant 0.000000e+00 : f32
    %15 = vector.broadcast %cst_11 : f32 to vector<8x256xf32>
    %16 = arith.maximumf %14, %15 : vector<8x256xf32>
    %17 = arith.truncf %16 : vector<8x256xf32> to vector<8x256xbf16>
    %c0_12 = arith.constant 0 : index
    %c0_13 = arith.constant 0 : index
    %18 = vector.load %arg6[%c0_12, %c0_13] : memref<256x256xbf16, #tpu.memory_space<vmem>>, vector<256x256xbf16>
    %cst_14 = arith.constant dense<0.000000e+00> : vector<8x256xf32>
    %19 = tpu.matmul %17, %18, %cst_14 {dimension_numbers = #tpu.dot_dimension_numbers<[1], [0], [0], [1], [0, 0, 1, 1], [], []>} : vector<8x256xbf16>, vector<256x256xbf16>, vector<8x256xf32> -> vector<8x256xf32>
    %c0_15 = arith.constant 0 : index
    %c0_16 = arith.constant 0 : index
    %20 = vector.load %arg7[%c0_15, %c0_16] : memref<1x256xf32, #tpu.memory_space<vmem>>, vector<1x256xf32>
    %21 = vector.broadcast %20 : vector<1x256xf32> to vector<8x256xf32>
    %22 = arith.addf %19, %21 : vector<8x256xf32>
    %cst_17 = arith.constant 0.000000e+00 : f32
    %23 = vector.broadcast %cst_17 : f32 to vector<8x256xf32>
    %24 = arith.maximumf %22, %23 : vector<8x256xf32>
    %25 = arith.truncf %24 : vector<8x256xf32> to vector<8x256xbf16>
    %c0_18 = arith.constant 0 : index
    %c0_19 = arith.constant 0 : index
    %26 = vector.load %arg8[%c0_18, %c0_19] : memref<256x128xbf16, #tpu.memory_space<vmem>>, vector<256x128xbf16>
    %cst_20 = arith.constant dense<0.000000e+00> : vector<8x128xf32>
    %27 = tpu.matmul %25, %26, %cst_20 {dimension_numbers = #tpu.dot_dimension_numbers<[1], [0], [0], [1], [0, 0, 1, 1], [], []>} : vector<8x256xbf16>, vector<256x128xbf16>, vector<8x128xf32> -> vector<8x128xf32>
    %c0_21 = arith.constant 0 : index
    %c0_22 = arith.constant 0 : index
    %28 = vector.load %arg9[%c0_21, %c0_22] : memref<1x128xf32, #tpu.memory_space<vmem>>, vector<1x128xf32>
    %29 = vector.broadcast %28 : vector<1x128xf32> to vector<8x128xf32>
    %30 = arith.addf %27, %29 : vector<8x128xf32>
    %31 = math.tanh %30 : vector<8x128xf32>
    %cst_23 = arith.constant 2.000000e+00 : f32
    %32 = vector.broadcast %cst_23 : f32 to vector<8x128xf32>
    %33 = arith.mulf %31, %32 : vector<8x128xf32>
    %c0_24 = arith.constant 0 : index
    %c0_25 = arith.constant 0 : index
    %34 = vector.load %arg10[%c0_24, %c0_25] : memref<8x128xf32, #tpu.memory_space<vmem>>, vector<8x128xf32>
    tpu.vector_store %arg10[%c0_24, %c0_25], %33 {strides = array<i32>} : memref<8x128xf32, #tpu.memory_space<vmem>>, vector<8x128xf32>,
    return
  }
  func.func @transform_0(%arg0: i32) -> (i32, i32) {
    %c0_i32 = arith.constant 0 : i32
    %c0_i32_0 = arith.constant 0 : i32
    return %arg0, %c0_i32 : i32, i32
  }
  func.func @transform_1(%arg0: i32) -> (i32, i32) {
    %c0_i32 = arith.constant 0 : i32
    %c0_i32_0 = arith.constant 0 : i32
    %c0_i32_1 = arith.constant 0 : i32
    return %c0_i32, %c0_i32_0 : i32, i32
  }
  func.func @transform_2(%arg0: i32) -> (i32, i32) {
    %c0_i32 = arith.constant 0 : i32
    %c0_i32_0 = arith.constant 0 : i32
    %c0_i32_1 = arith.constant 0 : i32
    return %c0_i32, %c0_i32_0 : i32, i32
  }
  func.func @transform_3(%arg0: i32) -> (i32, i32) {
    %c0_i32 = arith.constant 0 : i32
    %c0_i32_0 = arith.constant 0 : i32
    %c0_i32_1 = arith.constant 0 : i32
    return %c0_i32, %c0_i32_0 : i32, i32
  }
  func.func @transform_4(%arg0: i32) -> (i32, i32) {
    %c0_i32 = arith.constant 0 : i32
    %c0_i32_0 = arith.constant 0 : i32
    %c0_i32_1 = arith.constant 0 : i32
    return %c0_i32, %c0_i32_0 : i32, i32
  }
  func.func @transform_5(%arg0: i32) -> (i32, i32) {
    %c0_i32 = arith.constant 0 : i32
    %c0_i32_0 = arith.constant 0 : i32
    %c0_i32_1 = arith.constant 0 : i32
    return %c0_i32, %c0_i32_0 : i32, i32
  }
  func.func @transform_6(%arg0: i32) -> (i32, i32) {
    %c0_i32 = arith.constant 0 : i32
    %c0_i32_0 = arith.constant 0 : i32
    %c0_i32_1 = arith.constant 0 : i32
    return %c0_i32, %c0_i32_0 : i32, i32
  }
  func.func @transform_7(%arg0: i32) -> (i32, i32) {
    %c0_i32 = arith.constant 0 : i32
    %c0_i32_0 = arith.constant 0 : i32
    %c0_i32_1 = arith.constant 0 : i32
    return %c0_i32, %c0_i32_0 : i32, i32
  }
  func.func @transform_8(%arg0: i32) -> (i32, i32) {
    %c0_i32 = arith.constant 0 : i32
    %c0_i32_0 = arith.constant 0 : i32
    %c0_i32_1 = arith.constant 0 : i32
    return %c0_i32, %c0_i32_0 : i32, i32
  }
  func.func @transform_9(%arg0: i32) -> (i32, i32) {
    %c0_i32 = arith.constant 0 : i32
    %c0_i32_0 = arith.constant 0 : i32
    return %arg0, %c0_i32 : i32, i32
  }
}

</mosaic_0001>

<bundles_post_ra>
// kernel: tpu_custom_call.1
= control target key start
LH: loop header
LB: loop body
LE: loop exit
PB: predicated region body
PF: predicated region fallthrough
CT: control target
= control target key end

     0   :  { %14 = vsyncpa [#allocation3], 0  ;;  %s1406_s0 = inlined_call_operand.hbm [shape: f32[8,16], index: 0, kind: input, shape index: {}]   ;;  %s1407_s1 = inlined_call_operand.hbm [shape: bf16[16,256], index: 1, kind: input, shape index: {}]   ;;  %s1408_s2 = inlined_call_operand.vmem [shape: f32[1,256], index: 2, kind: input, shape index: {}]   ;;  %s1409_s3 = inlined_call_operand.hbm [shape: bf16[256,256], index: 3, kind: input, shape index: {}]   ;;  %s1410_s4 = inlined_call_operand.vmem [shape: f32[1,256], index: 4, kind: input, shape index: {}]   ;;  %s1411_s5 = inlined_call_operand.hbm [shape: bf16[256,256], index: 5, kind: input, shape index: {}]   ;;  %s1412_s6 = inlined_call_operand.vmem [shape: f32[1,256], index: 6, kind: input, shape index: {}]   ;;  %s1413_s7 = inlined_call_operand.hbm [shape: bf16[256,128], index: 7, kind: input, shape index: {}]   ;;  %s1414_s8 = inlined_call_operand.vmem [shape: f32[1,128], index: 8, kind: input, shape index: {}]   ;;  %s1415_s9 = inlined_call_operand.hbm [shape: f32[8,128], index: 9, kind: output, shape index: {}]  }
   0x1   :  { %15 = vsyncpa [#allocation6], 0 }
   0x2   :  { %16 = vsyncpa [#allocation9], 0 }
   0x3   :  { %17 = vsyncpa [#allocation4], 0  ;;  %s1242_s30 = smov [#allocation5]   ;;  %s1102_s13 = scalar_lea.hbm %s1407_s1, 256 }
   0x4   :  { %s33_s10 = sshll.u32 %s1242_s30, 4  ;;  %p1103_p0 = scmp.ne.s32.totalorder %s1407_s1, %s1102_s13  ;;  %s34_s10 = int_to_ptr.vmem [resolvable:$true] %s33_s10 }
   0x5   :  { %p1106_p1 = scmp.lt.u32.totalorder %s1102_s13, %s1407_s1 }
   0x7   :  { %p1108_p2 = pnand %p1106_p1, %p1103_p0 }
   0x9   :  { %1111 = shalt.err (!%p1108_p2)
}
   0xa   :  { %s1112_s18 = scalar_lea.vmem %s34_s10, 256  ;;  %p1117_p4 = scmp.lt.s32.totalorder %s34_s10, %s34_s10 }
   0xb   :  { %p1113_p3 = scmp.ne.s32.totalorder %s34_s10, %s1112_s18  ;;  %p1118_p5 = scmp.lt.s32.totalorder %s1112_s18, %s1112_s18 }
   0xd   :  { %p1119_p6 = por %p1118_p5, %p1117_p4 }
   0xf   :  { %p1120_p7 = pnand %p1119_p6, %p1113_p3 }
  0x11   :  { %1123 = shalt.err (!%p1120_p7)
}
  0x12   :  { %s1243_s19 = smov 128   ;;  %s1244_s20 = smov 8  }
  0x13   :  { %39 = dma.hbm_to_vmem [thread:$0]  %s1407_s1, 256, %s34_s10, [#allocation6], %s1243_s19, %s1243_s19, %s1244_s20  }
  0x14   :  { %s1245_s23 = smov [#allocation8]   ;;  %s1246_s25 = smov [#allocation2]  }
  0x15   :  { %s61_s24 = sshll.u32 %s1245_s23, 4  ;;  %s24_s26 = sshll.u32 %s1246_s25, 4  ;;  %s62_s24 = int_to_ptr.vmem [resolvable:$true] %s61_s24  ;;  %s25_s26 = int_to_ptr.vmem [resolvable:$true] %s24_s26 }
  0x16   :  { %s1124_s29 = scalar_lea.hbm %s1411_s5, 4096 }
  0x17   :  { %p1125_p8 = scmp.ne.s32.totalorder %s1411_s5, %s1124_s29  ;;  %p1128_p9 = scmp.lt.u32.totalorder %s1124_s29, %s1411_s5 }
  0x19   :  { %p1130_p10 = pnand %p1128_p9, %p1125_p8 }
  0x1b   :  { %1133 = shalt.err (!%p1130_p10)
}
  0x1c   :  { %s1134_s1 = scalar_lea.vmem %s62_s24, 4096  ;;  %p1139_p12 = scmp.lt.s32.totalorder %s62_s24, %s62_s24 }
  0x1d   :  { %p1135_p11 = scmp.ne.s32.totalorder %s62_s24, %s1134_s1  ;;  %p1140_p13 = scmp.lt.s32.totalorder %s1134_s1, %s1134_s1 }
  0x1f   :  { %p1141_p0 = por %p1140_p13, %p1139_p12 }
  0x21   :  { %p1142_p1 = pnand %p1141_p0, %p1135_p11 }
  0x23   :  { %1145 = shalt.err (!%p1142_p1)
}
  0x24   :  { %67 = dma.hbm_to_vmem [thread:$0]  %s1411_s5, 4096, %s62_s24, [#allocation9], %s1243_s19, %s1243_s19, %s1244_s20  }
  0x25   :  { %s1146_s17 = scalar_lea.hbm %s1406_s0, 128 }
  0x26   :  { %p1147_p2 = scmp.ne.s32.totalorder %s1406_s0, %s1146_s17  ;;  %p1150_p3 = scmp.lt.u32.totalorder %s1146_s17, %s1406_s0 }
  0x28   :  { %p1152_p4 = pnand %p1150_p3, %p1147_p2 }
  0x2a   :  { %1155 = shalt.err (!%p1152_p4)
}
  0x2b   :  { %s1156_s25 = scalar_lea.vmem %s25_s26, 128  ;;  %p1161_p6 = scmp.lt.s32.totalorder %s25_s26, %s25_s26 }
  0x2c   :  { %p1157_p5 = scmp.ne.s32.totalorder %s25_s26, %s1156_s25  ;;  %p1162_p7 = scmp.lt.s32.totalorder %s1156_s25, %s1156_s25 }
  0x2e   :  { %p1163_p8 = por %p1162_p7, %p1161_p6 }
  0x30   :  { %p1164_p9 = pnand %p1163_p8, %p1157_p5 }
  0x32   :  { %1167 = shalt.err (!%p1164_p9)
}
  0x33   :  { %27 = dma.hbm_to_vmem [thread:$0]  %s1406_s0, 128, %s25_s26, [#allocation3]  }
  0x34   :  { %s1247_s27 = smov [#allocation7]   ;;  %s1248_s29 = smov [#allocation10]  }
  0x35   :  { %s47_s28 = sshll.u32 %s1247_s27, 4  ;;  %s75_s30 = sshll.u32 %s1248_s29, 4  ;;  %s48_s28 = int_to_ptr.vmem [resolvable:$true] %s47_s28  ;;  %s76_s30 = int_to_ptr.vmem [resolvable:$true] %s75_s30 }
  0x36   :  { %s1168_s13 = scalar_lea.hbm %s1409_s3, 4096 }
  0x37   :  { %p1169_p10 = scmp.ne.s32.totalorder %s1409_s3, %s1168_s13  ;;  %p1172_p11 = scmp.lt.u32.totalorder %s1168_s13, %s1409_s3 }
  0x39   :  { %p1174_p12 = pnand %p1172_p11, %p1169_p10 }
  0x3b   :  { %1177 = shalt.err (!%p1174_p12)
}
  0x3c   :  { %s1178_s0 = scalar_lea.vmem %s48_s28, 4096  ;;  %p1183_p0 = scmp.lt.s32.totalorder %s48_s28, %s48_s28 }
  0x3d   :  { %p1179_p13 = scmp.ne.s32.totalorder %s48_s28, %s1178_s0  ;;  %p1184_p1 = scmp.lt.s32.totalorder %s1178_s0, %s1178_s0 }
  0x3f   :  { %p1185_p2 = por %p1184_p1, %p1183_p0 }
  0x41   :  { %p1186_p3 = pnand %p1185_p2, %p1179_p13 }
  0x43   :  { %1189 = shalt.err (!%p1186_p3)
}
  0x44   :  { %53 = dma.hbm_to_vmem [thread:$0]  %s1409_s3, 4096, %s48_s28, [#allocation6], %s1243_s19, %s1243_s19, %s1244_s20  }
  0x45   :  { %s1190_s21 = scalar_lea.hbm %s1413_s7, 2048 }
  0x46   :  { %p1191_p4 = scmp.ne.s32.totalorder %s1413_s7, %s1190_s21  ;;  %p1194_p5 = scmp.lt.u32.totalorder %s1190_s21, %s1413_s7 }
  0x48   :  { %p1196_p6 = pnand %p1194_p5, %p1191_p4 }
  0x4a   :  { %1199 = shalt.err (!%p1196_p6)
}
  0x4b   :  { %s1200_s24 = scalar_lea.vmem %s76_s30, 2048  ;;  %p1205_p8 = scmp.lt.s32.totalorder %s76_s30, %s76_s30 }
  0x4c   :  { %p1201_p7 = scmp.ne.s32.totalorder %s76_s30, %s1200_s24  ;;  %p1206_p9 = scmp.lt.s32.totalorder %s1200_s24, %s1200_s24 }
  0x4e   :  { %p1207_p10 = por %p1206_p9, %p1205_p8 }
  0x50   :  { %p1208_p11 = pnand %p1207_p10, %p1201_p7 }
  0x52   :  { %1211 = shalt.err (!%p1208_p11)
}
  0x53   :  { %s1249_s3 = smov 64   ;;  %s1250_s19 = smov 4  }
  0x54   :  { %81 = dma.hbm_to_vmem [thread:$0]  %s1413_s7, 2048, %s76_s30, [#allocation9], %s1249_s3, %s1249_s3, %s1250_s19  }
  0x55   :  { %1234 = dma.done.wait [#allocation3], 128  }
  0x56   :  { %1235 = vsyncadd [#allocation3], 4294967168 }
  0x57   :  { %1236 = dma.done.wait [#allocation6], 4352  }
  0x58   :  { %1237 = vsyncadd [#allocation6], 4294962944 }
  0x59   :  { %1238 = dma.done.wait [#allocation9], 6144  }
  0x5a   :  { %1239 = vsyncadd [#allocation9], 4294961152  ;;  %v1251_v0 = vmov 0   ;;  %v985_v1 = vld [vmem:[#allocation5 + $0x4] ss:$8 sps:$4 sm:$0xff]   ;;  %v100_v3 = vld [vmem:[#allocation2] sm:$0xff] }
  0x5b   :  { %162 = vmatprep.mubr.bf16.mxu0 %v1251_v0  ;;  %v987_v2 = vld [vmem:[#allocation5] ss:$8 sps:$4 sm:$0xff]   ;;  %130 = vmatprep.subr.bf16.mxu0 %v985_v1  ;;  %v101_v4 = vpack.c.bf16 %v100_v3, %v100_v3  ;;  %v988_v5 = vld [vmem:[#allocation7 + $0x4] ss:$8 sps:$4 sm:$0xff]   ;;  %v990_v6 = vld [vmem:[#allocation7] ss:$8 sps:$4 sm:$0xff]   ;;  %v106_v1 = vlaneseq }
  0x5c   :  { %131 = vmatpush1.bf16.msra.mxu0 %v987_v2  ;;  %vm126_vm0 = vcmask 130048   ;;  %v991_v7 = vld [vmem:[#allocation7 + $0x14] ss:$8 sps:$4 sm:$0xff]   ;;  %379 = vmatprep.subr.bf16.mxu1 %v988_v5  ;;  %v993_v8 = vld [vmem:[#allocation7 + $0x10] ss:$8 sps:$4 sm:$0xff]  }
  0x5d   :  { %380 = vmatpush1.bf16.msra.mxu1 %v990_v6  ;;  %v994_v9 = vld [vmem:[#allocation7 + $0x24] ss:$8 sps:$4 sm:$0xff]   ;;  %v996_v10 = vld [vmem:[#allocation7 + $0x20] ss:$8 sps:$4 sm:$0xff]   ;;  %v997_v11 = vld [vmem:[#allocation7 + $0x34] ss:$8 sps:$4 sm:$0xff]  }
  0x5e   :  { %381 = vmatprep.subr.bf16.mxu1 %v991_v7  ;;  %v999_v12 = vld [vmem:[#allocation7 + $0x30] ss:$8 sps:$4 sm:$0xff]   ;;  %v1000_v13 = vld [vmem:[#allocation7 + $0x44] ss:$8 sps:$4 sm:$0xff]   ;;  %v1002_v14 = vld [vmem:[#allocation7 + $0x40] ss:$8 sps:$4 sm:$0xff]  }
  0x5f   :  { %870 = vmatmul.mubr.msk.bf16.vlgmr.msra.gmra.mrb[0].mxu0 %vm126_vm0, %v101_v4  ;;  %v1003_v15 = vld [vmem:[#allocation7 + $0x54] ss:$8 sps:$4 sm:$0xff]   ;;  %v1005_v16 = vld [vmem:[#allocation7 + $0x50] ss:$8 sps:$4 sm:$0xff]   ;;  %v1006_v17 = vld [vmem:[#allocation7 + $0x64] ss:$8 sps:$4 sm:$0xff]  }
  0x60   :  { %v1008_v18 = vld [vmem:[#allocation7 + $0x60] ss:$8 sps:$4 sm:$0xff]   ;;  %v1009_v19 = vld [vmem:[#allocation7 + $0x74] ss:$8 sps:$4 sm:$0xff]   ;;  %v1011_v20 = vld [vmem:[#allocation7 + $0x70] ss:$8 sps:$4 sm:$0xff]  }
  0x61   :  { %382 = vmatpush1.bf16.msra.mxu1 %v993_v8  ;;  %v1012_v21 = vld [vmem:[#allocation7 + $0x84] ss:$8 sps:$4 sm:$0xff]   ;;  %v1014_v22 = vld [vmem:[#allocation7 + $0x80] ss:$8 sps:$4 sm:$0xff]   ;;  %v1015_v23 = vld [vmem:[#allocation7 + $0x94] ss:$8 sps:$4 sm:$0xff]  }
  0x62   :  { %383 = vmatprep.subr.bf16.mxu1 %v994_v9  ;;  %v1017_v24 = vld [vmem:[#allocation7 + $0x90] ss:$8 sps:$4 sm:$0xff]   ;;  %v1018_v25 = vld [vmem:[#allocation7 + $0xa4] ss:$8 sps:$4 sm:$0xff]   ;;  %v1020_v26 = vld [vmem:[#allocation7 + $0xa0] ss:$8 sps:$4 sm:$0xff]  }
  0x63   :  { %v1021_v27 = vld [vmem:[#allocation7 + $0xb4] ss:$8 sps:$4 sm:$0xff]   ;;  %v1023_v28 = vld [vmem:[#allocation7 + $0xb0] ss:$8 sps:$4 sm:$0xff]   ;;  %v1024_v29 = vld [vmem:[#allocation7 + $0xc4] ss:$8 sps:$4 sm:$0xff]  }
  0x64   :  { %v1026_v30 = vld [vmem:[#allocation7 + $0xc0] ss:$8 sps:$4 sm:$0xff]   ;;  %v1027_v31 = vld [vmem:[#allocation7 + $0xd4] ss:$8 sps:$4 sm:$0xff]   ;;  %v1029_v32 = vld [vmem:[#allocation7 + $0xd0] ss:$8 sps:$4 sm:$0xff]  }
  0x65   :  { %384 = vmatpush1.bf16.msra.mxu1 %v996_v10  ;;  %v1030_v33 = vld [vmem:[#allocation7 + $0xe4] ss:$8 sps:$4 sm:$0xff]   ;;  %v1032_v34 = vld [vmem:[#allocation7 + $0xe0] ss:$8 sps:$4 sm:$0xff]   ;;  %v1033_v35 = vld [vmem:[#allocation7 + $0xf4] ss:$8 sps:$4 sm:$0xff]  }
  0x66   :  { %385 = vmatprep.subr.bf16.mxu1 %v997_v11  ;;  %v1035_v36 = vld [vmem:[#allocation7 + $0xf0] ss:$8 sps:$4 sm:$0xff]   ;;  %v1036_v37 = vld [vmem:[#allocation8] ss:$8 sps:$4 sm:$0xff]   ;;  %v1038_v38 = vld [vmem:[#allocation8 + $0x4] ss:$8 sps:$4 sm:$0xff]  }
  0x67   :  { %v1041_v39 = vld [vmem:[#allocation8 + $0x14] ss:$8 sps:$4 sm:$0xff]   ;;  %628 = vmatprep.subr.bf16.mxu0 %v1038_v38  ;;  %v1039_v40 = vld [vmem:[#allocation8 + $0x10] ss:$8 sps:$4 sm:$0xff]   ;;  %v1044_v41 = vld [vmem:[#allocation8 + $0x24] ss:$8 sps:$4 sm:$0xff]  }
  0x68   :  { %629 = vmatpush1.bf16.msra.mxu0 %v1036_v37  ;;  %v1042_v42 = vld [vmem:[#allocation8 + $0x20] ss:$8 sps:$4 sm:$0xff]   ;;  %v1047_v43 = vld [vmem:[#allocation8 + $0x34] ss:$8 sps:$4 sm:$0xff]   ;;  %v1045_v44 = vld [vmem:[#allocation8 + $0x30] ss:$8 sps:$4 sm:$0xff]  }
  0x69   :  { %386 = vmatpush1.bf16.msra.mxu1 %v999_v12  ;;  %630 = vmatprep.subr.bf16.mxu0 %v1041_v39  ;;  %v1050_v45 = vld [vmem:[#allocation8 + $0x44] ss:$8 sps:$4 sm:$0xff]   ;;  %v1048_v46 = vld [vmem:[#allocation8 + $0x40] ss:$8 sps:$4 sm:$0xff]   ;;  %v1053_v47 = vld [vmem:[#allocation8 + $0x54] ss:$8 sps:$4 sm:$0xff]  }
  0x6a   :  { %387 = vmatprep.subr.bf16.mxu1 %v1000_v13  ;;  %v1051_v48 = vld [vmem:[#allocation8 + $0x50] ss:$8 sps:$4 sm:$0xff]   ;;  %v1056_v49 = vld [vmem:[#allocation8 + $0x64] ss:$8 sps:$4 sm:$0xff]   ;;  %v1054_v50 = vld [vmem:[#allocation8 + $0x60] ss:$8 sps:$4 sm:$0xff]  }
  0x6b   :  { %v1059_v51 = vld [vmem:[#allocation8 + $0x74] ss:$8 sps:$4 sm:$0xff]   ;;  %v1057_v52 = vld [vmem:[#allocation8 + $0x70] ss:$8 sps:$4 sm:$0xff]   ;;  %v1062_v53 = vld [vmem:[#allocation8 + $0x84] ss:$8 sps:$4 sm:$0xff]  }
  0x6c   :  { %631 = vmatpush1.bf16.msra.mxu0 %v1039_v40  ;;  %v1060_v54 = vld [vmem:[#allocation8 + $0x80] ss:$8 sps:$4 sm:$0xff]   ;;  %v1065_v55 = vld [vmem:[#allocation8 + $0x94] ss:$8 sps:$4 sm:$0xff]   ;;  %v1063_v56 = vld [vmem:[#allocation8 + $0x90] ss:$8 sps:$4 sm:$0xff]  }
  0x6d   :  { %388 = vmatpush1.bf16.msra.mxu1 %v1002_v14  ;;  %632 = vmatprep.subr.bf16.mxu0 %v1044_v41  ;;  %v1068_v57 = vld [vmem:[#allocation8 + $0xa4] ss:$8 sps:$4 sm:$0xff]   ;;  %v1066_v58 = vld [vmem:[#allocation8 + $0xa0] ss:$8 sps:$4 sm:$0xff]   ;;  %v1071_v59 = vld [vmem:[#allocation8 + $0xb4] ss:$8 sps:$4 sm:$0xff]  }
  0x6e   :  { %389 = vmatprep.subr.bf16.mxu1 %v1003_v15  ;;  %v1069_v60 = vld [vmem:[#allocation8 + $0xb0] ss:$8 sps:$4 sm:$0xff]   ;;  %v1074_v61 = vld [vmem:[#allocation8 + $0xc4] ss:$8 sps:$4 sm:$0xff]   ;;  %v1072_v62 = vld [vmem:[#allocation8 + $0xc0] ss:$8 sps:$4 sm:$0xff]  }
  0x6f   :  { %v1077_v63 = vld [vmem:[#allocation8 + $0xd4] ss:$8 sps:$4 sm:$0xff]   ;;  %v1075_v0 = vld [vmem:[#allocation8 + $0xd0] ss:$8 sps:$4 sm:$0xff]   ;;  %v107_v2 = vshrl.u32 %v106_v1, 7 }
  0x70   :  { %633 = vmatpush1.bf16.msra.mxu0 %v1042_v42  ;;  %v104_v4 = vld [vmem:[%s1408_s2] sm:$0x3] }
  0x71   :  { %390 = vmatpush1.bf16.msra.mxu1 %v1005_v16  ;;  %634 = vmatprep.subr.bf16.mxu0 %v1047_v43  ;;  %v1372_v3 = vsub.s32 0, %v107_v2  ;;  %v1377_v5 = vsub.s32 1, %v107_v2  ;;  %v935_v1 = vld [vmem:[%s1414_s8] ss:$0 sm:$0xff] }
  0x72   :  { %391 = vmatprep.subr.bf16.mxu1 %v1006_v17 }
  0x73   :  { %v109_v6 = vrot.slane %v104_v4, %v1372_v3  ;;  %v113_v7 = vrot.slane %v104_v4, %v1377_v5 }
  0x74   :  { %635 = vmatpush1.bf16.msra.mxu0 %v1045_v44 }
  0x75   :  { %392 = vmatpush1.bf16.msra.mxu1 %v1008_v18  ;;  %636 = vmatprep.subr.bf16.mxu0 %v1050_v45  ;;  %v1080_v18 = vld [vmem:[#allocation8 + $0xe4] ss:$8 sps:$4 sm:$0xff]  }
  0x76   :  { %393 = vmatprep.subr.bf16.mxu1 %v1009_v19  ;;  %v1078_v19 = vld [vmem:[#allocation8 + $0xe0] ss:$8 sps:$4 sm:$0xff]  }
  0x78   :  { %637 = vmatpush1.bf16.msra.mxu0 %v1048_v46 }
  0x79   :  { %394 = vmatpush1.bf16.msra.mxu1 %v1011_v20  ;;  %638 = vmatprep.subr.bf16.mxu0 %v1053_v47  ;;  %v1083_v20 = vld [vmem:[#allocation8 + $0xf4] ss:$8 sps:$4 sm:$0xff]  }
  0x7a   :  { %395 = vmatprep.subr.bf16.mxu1 %v1012_v21  ;;  %v1081_v21 = vld [vmem:[#allocation8 + $0xf0] ss:$8 sps:$4 sm:$0xff]  }
  0x7b   :  { %v1096_v47 = vld [vmem:[#allocation10 + $0x70] sm:$0xff]  }
  0x7c   :  { %639 = vmatpush1.bf16.msra.mxu0 %v1051_v48  ;;  %v1097_v48 = vld [vmem:[#allocation10 + $0x30] sm:$0xff]  }
  0x7d   :  { %396 = vmatpush1.bf16.msra.mxu1 %v1014_v22  ;;  %640 = vmatprep.subr.bf16.mxu0 %v1056_v49  ;;  %v1084_v22 = vld [vmem:[#allocation10 + $0x40] sm:$0xff]   ;;  %v1098_v49 = vld [vmem:[#allocation10 + $0x78] sm:$0xff]  }
  0x7e   :  { %397 = vmatprep.subr.bf16.mxu1 %v1015_v23  ;;  %v1085_v23 = vld [vmem:[#allocation10] sm:$0xff]  }
  0x80   :  { %641 = vmatpush1.bf16.msra.mxu0 %v1054_v50  ;;  %v1099_v50 = vld [vmem:[#allocation10 + $0x38] sm:$0xff]  }
  0x81   :  { %398 = vmatpush1.bf16.msra.mxu1 %v1017_v24  ;;  %642 = vmatprep.subr.bf16.mxu0 %v1059_v51  ;;  %v1086_v24 = vld [vmem:[#allocation10 + $0x48] sm:$0xff]  }
  0x82   :  { %399 = vmatprep.subr.bf16.mxu1 %v1018_v25  ;;  %v1087_v25 = vld [vmem:[#allocation10 + $0x8] sm:$0xff]  }
  0x83   :  { %v456_v51 = vld [vmem:[%s1412_s6] sm:$0x3]  ;;  %s1252_s6 = smov [#allocation11]  }
  0x84   :  { %643 = vmatpush1.bf16.msra.mxu0 %v1057_v52  ;;  %v461_v52 = vrot.slane %v456_v51, %v1372_v3  ;;  %s857_s13 = sshll.u32 %s1252_s6, 4  ;;  %s858_s13 = int_to_ptr.vmem [resolvable:$true] %s857_s13 }
  0x85   :  { %400 = vmatpush1.bf16.msra.mxu1 %v1020_v26  ;;  %644 = vmatprep.subr.bf16.mxu0 %v1062_v53  ;;  %v1088_v26 = vld [vmem:[#allocation10 + $0x50] sm:$0xff]   ;;  %v465_v53 = vrot.slane %v456_v51, %v1377_v5  ;;  %s1212_s1 = scalar_lea.vmem %s858_s13, 128  ;;  %p1217_p13 = scmp.lt.s32.totalorder %s858_s13, %s858_s13 }
  0x86   :  { %401 = vmatprep.subr.bf16.mxu1 %v1021_v27  ;;  %v1089_v27 = vld [vmem:[#allocation10 + $0x10] sm:$0xff]   ;;  %p1213_p12 = scmp.ne.s32.totalorder %s858_s13, %s1212_s1  ;;  %p1218_p0 = scmp.lt.s32.totalorder %s1212_s1, %s1212_s1 }
  0x88   :  { %645 = vmatpush1.bf16.msra.mxu0 %v1060_v54  ;;  %p1219_p1 = por %p1218_p0, %p1217_p13 }
  0x89   :  { %402 = vmatpush1.bf16.msra.mxu1 %v1023_v28  ;;  %646 = vmatprep.subr.bf16.mxu0 %v1065_v55  ;;  %v1090_v28 = vld [vmem:[#allocation10 + $0x58] sm:$0xff]  }
  0x8a   :  { %403 = vmatprep.subr.bf16.mxu1 %v1024_v29  ;;  %v1091_v29 = vld [vmem:[#allocation10 + $0x18] sm:$0xff]   ;;  %p1220_p2 = pnand %p1219_p1, %p1213_p12 }
  0x8c   :  { %647 = vmatpush1.bf16.msra.mxu0 %v1063_v56 }
  0x8d   :  { %404 = vmatpush1.bf16.msra.mxu1 %v1026_v30  ;;  %648 = vmatprep.subr.bf16.mxu0 %v1068_v57  ;;  %v1092_v30 = vld [vmem:[#allocation10 + $0x60] sm:$0xff]  }
  0x8e   :  { %405 = vmatprep.subr.bf16.mxu1 %v1027_v31  ;;  %v1093_v31 = vld [vmem:[#allocation10 + $0x20] sm:$0xff]  }
  0x90   :  { %649 = vmatpush1.bf16.msra.mxu0 %v1066_v58 }
  0x91   :  { %406 = vmatpush1.bf16.msra.mxu1 %v1029_v32  ;;  %650 = vmatprep.subr.bf16.mxu0 %v1071_v59  ;;  %v1094_v32 = vld [vmem:[#allocation10 + $0x68] sm:$0xff]  }
  0x92   :  { %407 = vmatprep.subr.bf16.mxu1 %v1030_v33  ;;  %v1095_v33 = vld [vmem:[#allocation10 + $0x28] sm:$0xff]  }
  0x94   :  { %651 = vmatpush1.bf16.msra.mxu0 %v1069_v60 }
  0x95   :  { %408 = vmatpush1.bf16.msra.mxu1 %v1032_v34  ;;  %652 = vmatprep.subr.bf16.mxu0 %v1074_v61  ;;  %v207_v34 = vld [vmem:[%s1410_s4] sm:$0x3] }
  0x96   :  { %409 = vmatprep.subr.bf16.mxu1 %v1033_v35  ;;  %v212_v35 = vrot.slane %v207_v34, %v1372_v3 }
  0x98   :  { %653 = vmatpush1.bf16.msra.mxu0 %v1072_v62 }
  0x99   :  { %410 = vmatpush1.bf16.msra.mxu1 %v1035_v36  ;;  %654 = vmatprep.subr.bf16.mxu0 %v1077_v63  ;;  %v216_v36 = vrot.slane %v207_v34, %v1377_v5 }
  0x9a   :  { %952 = vmatprep.subr.bf16.mxu1 %v1084_v22 }
  0x9c   :  { %655 = vmatpush1.bf16.msra.mxu0 %v1075_v0 }
  0x9d   :  { %656 = vmatprep.subr.bf16.mxu0 %v1080_v18 }
  0xa0   :  { %657 = vmatpush1.bf16.msra.mxu0 %v1078_v19 }
  0xa1   :  { %658 = vmatprep.subr.bf16.mxu0 %v1083_v20 }
  0xa4   :  { %659 = vmatpush1.bf16.msra.mxu0 %v1081_v21 }
 0x132   :  { %v164_v8 = vpop.f32.mrb[0].mxu0 }
 0x133   :  { %v165_v9 = vadd.f32 %v164_v8, %v109_v6  ;;  %v166_v10 = vpop.f32.mrb[1].mxu0 }
 0x134   :  { %v167_v11 = vadd.f32 %v166_v10, %v113_v7  ;;  %v168_v12 = vpop.f32.mrb[2].mxu0 }
 0x135   :  { %v171_v13 = vmax.f32 %v165_v9, 0.0  ;;  %v169_v14 = vpop.f32.mrb[3].mxu0 }
 0x136   :  { %v172_v15 = vmax.f32 %v167_v11, 0.0 }
 0x137   :  { %v173_v17 = vpack.c.bf16 %v171_v13, %v171_v13 }
 0x138   :  { %v174_v16 = vpack.c.bf16 %v172_v15, %v172_v15 }
 0x13a   :  { %411 = vmatprep.mubr.bf16.mxu1 %v174_v16 }
 0x13b   :  { %412 = vmatmul.mubr.bf16.vlgmr.msra.gmra.mrb[0].mxu1 %v173_v17 }
 0x13c   :  { %953 = vmatpush3.bf16.msra.mxu1 %v1085_v23 }
 0x13d   :  { %954 = vmatprep.subr.bf16.mxu1 %v1086_v24 }
 0x140   :  { %955 = vmatpush3.bf16.msra.mxu1 %v1087_v25 }
 0x141   :  { %956 = vmatprep.subr.bf16.mxu1 %v1088_v26 }
 0x144   :  { %957 = vmatpush3.bf16.msra.mxu1 %v1089_v27 }
 0x145   :  { %958 = vmatprep.subr.bf16.mxu1 %v1090_v28 }
 0x148   :  { %959 = vmatpush3.bf16.msra.mxu1 %v1091_v29 }
 0x149   :  { %960 = vmatprep.subr.bf16.mxu1 %v1092_v30 }
 0x14c   :  { %961 = vmatpush3.bf16.msra.mxu1 %v1093_v31 }
 0x14d   :  { %962 = vmatprep.subr.bf16.mxu1 %v1094_v32 }
 0x150   :  { %963 = vmatpush3.bf16.msra.mxu1 %v1095_v33 }
 0x151   :  { %964 = vmatprep.subr.bf16.mxu1 %v1096_v47 }
 0x154   :  { %965 = vmatpush3.bf16.msra.mxu1 %v1097_v48 }
 0x155   :  { %966 = vmatprep.subr.bf16.mxu1 %v1098_v49 }
 0x158   :  { %967 = vmatpush3.bf16.msra.mxu1 %v1099_v50 }
 0x20e   :  { %v413_v37 = vpop.f32.mrb[0].mxu1 }
 0x20f   :  { %v414_v38 = vadd.f32 %v413_v37, %v212_v35  ;;  %v415_v39 = vpop.f32.mrb[1].mxu1 }
 0x210   :  { %v416_v40 = vadd.f32 %v415_v39, %v216_v36  ;;  %v417_v41 = vpop.f32.mrb[2].mxu1 }
 0x211   :  { %v420_v42 = vmax.f32 %v414_v38, 0.0  ;;  %v418_v43 = vpop.f32.mrb[3].mxu1 }
 0x212   :  { %v421_v44 = vmax.f32 %v416_v40, 0.0 }
 0x213   :  { %v422_v46 = vpack.c.bf16 %v420_v42, %v420_v42 }
 0x214   :  { %v423_v45 = vpack.c.bf16 %v421_v44, %v421_v44 }
 0x216   :  { %660 = vmatprep.mubr.bf16.mxu0 %v423_v45 }
 0x217   :  { %661 = vmatmul.mubr.bf16.vlgmr.msra.gmra.mrb[4].mxu0 %v422_v46 }
 0x2ea   :  { %v662_v54 = vpop.f32.mrb[4].mxu0 }
 0x2eb   :  { %v663_v55 = vadd.f32 %v662_v54, %v461_v52  ;;  %v664_v56 = vpop.f32.mrb[5].mxu0 }
 0x2ec   :  { %v665_v57 = vadd.f32 %v664_v56, %v465_v53  ;;  %v666_v58 = vpop.f32.mrb[6].mxu0 }
 0x2ed   :  { %v669_v59 = vmax.f32 %v663_v55, 0.0  ;;  %v667_v60 = vpop.f32.mrb[7].mxu0 }
 0x2ee   :  { %v670_v61 = vmax.f32 %v665_v57, 0.0 }
 0x2ef   :  { %v671_v63 = vpack.c.bf16 %v669_v59, %v669_v59 }
 0x2f0   :  { %v672_v62 = vpack.c.bf16 %v670_v61, %v670_v61 }
 0x2f2   :  { %840 = vmatprep.mubr.bf16.mxu1 %v672_v62 }
 0x2f3   :  { %841 = vmatmul.mubr.bf16.vlgmr.msra.gmra.mrb[4].mxu1 %v671_v63 }
 0x3c6   :  { %v968_v0 = vpop.f32.mrb[4].mxu1 }
 0x3c7   :  { %v969_v2 = vpop.f32.mrb[5].mxu1 }
 0x3c8   :  { %v970_v3 = vadd.f32 %v969_v2, %v968_v0  ;;  %v971_v4 = vpop.f32.mrb[6].mxu1 }
 0x3c9   :  { %v972_v5 = vpop.f32.mrb[7].mxu1 }
 0x3ca   :  { %v843_v6 = vadd.f32 %v970_v3, %v935_v1 }
 0x3cc   :  { %1100 = vtanh.f32 %v843_v6 }
 0x3d6   :  { %v1101_v7 = vpop.eup %1100 }
 0x3d7   :  { %v849_v8 = vmul.f32 2.0, %v1101_v7 }
 0x3d9   :  { %850 = vst [vmem:[#allocation11] sm:$0xff] %v849_v8 }
 0x3da   :  { %1223 = shalt.err (!%p1220_p2)
}
 0x3db   :  { %s1224_s14 = scalar_lea.hbm %s1415_s9, 128 }
 0x3dc   :  { %p1225_p3 = scmp.ne.s32.totalorder %s1415_s9, %s1224_s14  ;;  %p1228_p4 = scmp.lt.u32.totalorder %s1224_s14, %s1415_s9 }
 0x3de   :  { %p1230_p5 = pnand %p1228_p4, %p1225_p3 }
 0x3e0   :  { %1233 = shalt.err (!%p1230_p5)
}
 0x3e1   :  { %860 = dma.vmem_to_hbm [thread:$0]  %s858_s13, 128, %s1415_s9, [#allocation4]  }
 0x3e2   :  { %1240 = dma.done.wait [#allocation4], 128  }
 0x3e3   :  { %1241 = vsyncadd [#allocation4], 4294967168 }
 0x3e4   :  { %864 = vsyncpa [#allocation3], 1 }
 0x3e5   :  { %865 = vsyncpa [#allocation6], 1 }
 0x3e6   :  { %866 = vsyncpa [#allocation9], 1 }
 0x3e7   :  { %867 = vsyncpa [#allocation4], 1 }

</bundles_post_ra>
